<compile_context>
chip_gen: v7x
topology: tpu7x:2x2x1
jax: 0.10.0
libtpu: 0.0.40
codegen_flags: <defaults>
</compile_context>

<pallas_src>
import functools
import math

import jax
import jax.numpy as jnp
from jax.experimental import pallas as pl
from jax.experimental.pallas import tpu as pltpu

LANE = 128


def _round_up(x, m):
    return ((x + m - 1) // m) * m


def _attn_kernel(x_ref, wqkv_ref, bqkv_ref, o_ref, *, batch, seq_len, d_pad, scale):
    """x_ref:    (B*S, D)    batch-major flattened activations
       wqkv_ref: (D, 3*Dp)   fused, pre-transposed, zero-padded [V|Q|K] weight
       bqkv_ref: (1, 3*Dp)   fused bias
       o_ref:    (B*S, Dp)   contiguous lane-dense output (sliced in wrapper)"""
    x = x_ref[...]                          # (B*S, D)
    w = wqkv_ref[...]                       # (D, 3*Dp)
    b = bqkv_ref[...]                       # (1, 3*Dp)

    # One fused lane-dense QKV projection + single bias add.
    qkv = jnp.dot(x, w, preferred_element_type=jnp.float32) + b        # (B*S, 3*Dp)

    value = qkv[:, 0:d_pad].reshape(batch, seq_len, d_pad)             # (B, S, Dp)
    query = qkv[:, d_pad:2 * d_pad].reshape(batch, seq_len, d_pad)     # (B, S, Dp)
    keys = qkv[:, 2 * d_pad:3 * d_pad].reshape(batch, seq_len, d_pad)  # (B, S, Dp)

    # weights = value @ query^T / sqrt(hidden)  (padded lanes contribute 0)
    # TODO(synk): at production sizes keep query in an MXU-native orientation
    # (avoid the serial XLU transpose feeding the MXU); negligible at S=8.
    scores = jnp.einsum('bqd,bkd->bqk', value, query,
                        preferred_element_type=jnp.float32) * scale    # (B, S, S)

    # Numerically-stable softmax over the key axis, batched across B.
    scores = scores - jnp.max(scores, axis=-1, keepdims=True)
    p = jnp.exp(scores)
    p = p * pl.reciprocal(jnp.sum(p, axis=-1, keepdims=True), approx=True)

    out = jnp.einsum('bqk,bkd->bqd', p, keys,
                     preferred_element_type=jnp.float32)               # (B, S, Dp)

    # Single contiguous unmasked store of the whole result.
    o_ref[...] = out.reshape(batch * seq_len, d_pad).astype(o_ref.dtype)


def pack_qkv_weights(wv, bv, wq, bq, wk, bk, dim_in):
    """One-time prep: PyTorch Linear weights (out,in) -> fused pre-transposed
    lane-padded (D, 3*Dp) weight and (1, 3*Dp) bias. Call once, reuse forever."""
    d_pad = _round_up(max(wv.shape[0], wq.shape[0], wk.shape[0], 1), LANE)

    def pack(w, bias):
        wt = jnp.zeros((dim_in, d_pad), jnp.float32).at[:, :w.shape[0]].set(
            w.T.astype(jnp.float32))
        bt = jnp.zeros((d_pad,), jnp.float32).at[:bias.shape[0]].set(
            bias.astype(jnp.float32))
        return wt, bt

    wv_t, bv_p = pack(wv, bv)
    wq_t, bq_p = pack(wq, bq)
    wk_t, bk_p = pack(wk, bk)
    w_qkv = jnp.concatenate([wv_t, wq_t, wk_t], axis=1)               # (D, 3*Dp)
    b_qkv = jnp.concatenate([bv_p, bq_p, bk_p]).reshape(1, 3 * d_pad) # (1, 3*Dp)
    return w_qkv, b_qkv


@functools.partial(jax.jit, static_argnames=("d_out",))
def transformer_attn_pallas(seq, w_qkv, b_qkv, *, d_out):
    """seq: [Seq, Batch, Hidden] -> [Seq, Batch, key_dim] (mirrors TransformerAttn.forward).
    w_qkv / b_qkv come pre-fused from pack_qkv_weights (hoisted off the hot path)."""
    S, B, D = seq.shape
    dp3 = w_qkv.shape[1]
    d_pad = dp3 // 3
    scale = 1.0 / math.sqrt(D)    # original hidden size, not the padded width

    # Batch-major flatten so the kernel sees a dense (B*S, D) 2-D slab.
    x2d = jnp.transpose(seq, (1, 0, 2)).reshape(B * S, D)

    kernel = functools.partial(_attn_kernel, batch=B, seq_len=S,
                               d_pad=d_pad, scale=scale)

    out_flat = pl.pallas_call(
        kernel,
        out_shape=jax.ShapeDtypeStruct((B * S, d_pad), seq.dtype),
        grid_spec=pltpu.PrefetchScalarGridSpec(
            num_scalar_prefetch=0,
            grid=(1,),   # collapsed grid: fixed per-step overhead dominates at this size
            in_specs=[
                pl.BlockSpec((B * S, D), lambda i: (0, 0)),      # activations (flat)
                pl.BlockSpec((D, dp3), lambda i: (0, 0)),        # fused QKV weight
                pl.BlockSpec((1, dp3), lambda i: (0, 0)),        # fused QKV bias
            ],
            out_specs=pl.BlockSpec((B * S, d_pad), lambda i: (0, 0)),
        ),
        compiler_params=pltpu.CompilerParams(
            dimension_semantics=("arbitrary",)),
    )(x2d, w_qkv, b_qkv)

    # TODO(synk): at production sizes (large S / large B) switch to a parallel
    # batch/q-block grid axis ("parallel", ..., "arbitrary" over KV) to feed both
    # v7x TensorCores, tile the key axis flash-style with online softmax so the
    # (S,S) scores never materialize, size tiles against v7x's 64 MiB VMEM
    # (tq=tk<=512 f32), and use 256-aligned matmul tiles for the v6e/v7x MXU.
    out = out_flat.reshape(B, S, d_pad)[:, :, :d_out]       # (B, S, Dk)
    return jnp.transpose(out, (1, 0, 2))                    # (S, B, Dk)


def _reference(seq, wv, bv, wq, bq, wk, bk):
    """Pure-JAX mirror of the PyTorch forward pass, for correctness checking."""
    seq_in = jnp.transpose(seq, (1, 0, 2))
    value = seq_in @ wv.T + bv
    query = seq_in @ wq.T + bq
    keys = seq_in @ wk.T + bk
    weights = (value @ jnp.transpose(query, (0, 2, 1))) / math.sqrt(seq.shape[-1])
    weights = jax.nn.softmax(weights, axis=-1)
    return jnp.transpose(weights @ keys, (1, 0, 2))


if __name__ == "__main__":
    # Module defaults: dim_in = value_dim = key_dim = 40
    S, B, D = 8, 2, 40
    Dv, Dk = 40, 40

    key = jax.random.PRNGKey(0)
    k_seq, k_wv, k_bv, k_wq, k_bq, k_wk, k_bk = jax.random.split(key, 7)

    seq = jax.random.normal(k_seq, (S, B, D), dtype=jnp.float32)

    # Deterministic init mimicking nn.Linear's uniform(-1/sqrt(in), 1/sqrt(in))
    lim = 1.0 / math.sqrt(D)
    wv = jax.random.uniform(k_wv, (Dv, D), jnp.float32, -lim, lim)
    bv = jax.random.uniform(k_bv, (Dv,), jnp.float32, -lim, lim)
    wq = jax.random.uniform(k_wq, (Dv, D), jnp.float32, -lim, lim)
    bq = jax.random.uniform(k_bq, (Dv,), jnp.float32, -lim, lim)
    wk = jax.random.uniform(k_wk, (Dk, D), jnp.float32, -lim, lim)
    bk = jax.random.uniform(k_bk, (Dk,), jnp.float32, -lim, lim)

    # One-time weight packing (hoisted off the per-call path).
    w_qkv, b_qkv = pack_qkv_weights(wv, bv, wq, bq, wk, bk, D)
    w_qkv, b_qkv = jax.block_until_ready((w_qkv, b_qkv))

    out = transformer_attn_pallas(seq, w_qkv, b_qkv, d_out=Dk)
    out = jax.block_until_ready(out)

    ref = _reference(seq, wv, bv, wq, bq, wk, bk)
    assert out.shape == (S, B, Dk), out.shape
    assert jnp.allclose(out, ref, atol=2e-3, rtol=2e-3), float(jnp.max(jnp.abs(out - ref)))

    print("KERNEL_OK")
</pallas_src>

<mosaic_0001>
module attributes {stable_mosaic.version = 11 : i64} {
  func.func @_attn_kernel(%arg0: i32, %arg1: memref<16x40xf32, #tpu.memory_space<vmem>>, %arg2: memref<40x384xf32, #tpu.memory_space<vmem>>, %arg3: memref<1x384xf32, #tpu.memory_space<vmem>>, %arg4: memref<16x128xf32, #tpu.memory_space<vmem>>) attributes {dimension_semantics = [#tpu.dimension_semantics<arbitrary>], iteration_bounds = array<i64: 1>, scalar_prefetch = 0 : i64, scratch_operands = 0 : i64, tpu.core_type = #tpu.core_type<tc>, window_params = [{pipeline_mode = #tpu.pipeline_mode<synchronous>, transform_indices = @transform_0, window_bounds = array<i64: 16, 40>}, {pipeline_mode = #tpu.pipeline_mode<synchronous>, transform_indices = @transform_1, window_bounds = array<i64: 40, 384>}, {pipeline_mode = #tpu.pipeline_mode<synchronous>, transform_indices = @transform_2, window_bounds = array<i64: 1, 384>}, {pipeline_mode = #tpu.pipeline_mode<synchronous>, transform_indices = @transform_3, window_bounds = array<i64: 16, 128>}]} {
    %c0 = arith.constant 0 : index
    %c0_0 = arith.constant 0 : index
    %0 = vector.load %arg1[%c0, %c0_0] : memref<16x40xf32, #tpu.memory_space<vmem>>, vector<16x40xf32>
    %c0_1 = arith.constant 0 : index
    %c0_2 = arith.constant 0 : index
    %1 = vector.load %arg2[%c0_1, %c0_2] : memref<40x384xf32, #tpu.memory_space<vmem>>, vector<40x384xf32>
    %c0_3 = arith.constant 0 : index
    %c0_4 = arith.constant 0 : index
    %2 = vector.load %arg3[%c0_3, %c0_4] : memref<1x384xf32, #tpu.memory_space<vmem>>, vector<1x384xf32>
    %cst = arith.constant dense<0.000000e+00> : vector<16x384xf32>
    %3 = tpu.matmul %0, %1, %cst {dimension_numbers = #tpu.dot_dimension_numbers<[1], [0], [0], [1], [0, 0, 1, 1], [], []>} : vector<16x40xf32>, vector<40x384xf32>, vector<16x384xf32> -> vector<16x384xf32>
    %4 = vector.broadcast %2 : vector<1x384xf32> to vector<16x384xf32>
    %5 = arith.addf %3, %4 : vector<16x384xf32>
    %6 = vector.extract_strided_slice %5 {offsets = [0, 0], sizes = [16, 128], strides = [1, 1]} : vector<16x384xf32> to vector<16x128xf32>
    %7 = vector.shape_cast %6 : vector<16x128xf32> to vector<2x8x128xf32>
    %8 = vector.extract_strided_slice %5 {offsets = [0, 128], sizes = [16, 128], strides = [1, 1]} : vector<16x384xf32> to vector<16x128xf32>
    %9 = vector.shape_cast %8 : vector<16x128xf32> to vector<2x8x128xf32>
    %10 = vector.extract_strided_slice %5 {offsets = [0, 256], sizes = [16, 128], strides = [1, 1]} : vector<16x384xf32> to vector<16x128xf32>
    %11 = vector.shape_cast %10 : vector<16x128xf32> to vector<2x8x128xf32>
    "tpu.trace_start"() <{level = 10 : i32, message = "bqd,bkd->bqk"}> : () -> ()
    %cst_5 = arith.constant dense<0.000000e+00> : vector<2x8x8xf32>
    %12 = tpu.matmul %7, %9, %cst_5 {dimension_numbers = #tpu.dot_dimension_numbers<[2], [2], [1], [1], [0, 0, 0, 1, 1, 1], [0], [0]>} : vector<2x8x128xf32>, vector<2x8x128xf32>, vector<2x8x8xf32> -> vector<2x8x8xf32>
    "tpu.trace_stop"() : () -> ()
    %cst_6 = arith.constant 0.158113882 : f32
    %13 = vector.broadcast %cst_6 : f32 to vector<2x8x8xf32>
    %14 = arith.mulf %12, %13 : vector<2x8x8xf32>
    %cst_7 = arith.constant dense<0xFF800000> : vector<2x8xf32>
    %15 = vector.multi_reduction <maximumf>, %14, %cst_7 [2] : vector<2x8x8xf32> to vector<2x8xf32>
    %16 = vector.shape_cast %15 : vector<2x8xf32> to vector<2x8x1xf32>
    %17 = vector.broadcast %16 : vector<2x8x1xf32> to vector<2x8x8xf32>
    %18 = arith.subf %14, %17 : vector<2x8x8xf32>
    %19 = math.exp %18 : vector<2x8x8xf32>
    %cst_8 = arith.constant dense<0.000000e+00> : vector<2x8xf32>
    %20 = vector.multi_reduction <add>, %19, %cst_8 [2] : vector<2x8x8xf32> to vector<2x8xf32>
    %21 = vector.shape_cast %20 : vector<2x8xf32> to vector<2x8x1xf32>
    %22 = tpu.reciprocal %21 {approx = true} : vector<2x8x1xf32> -> vector<2x8x1xf32>
    %23 = vector.broadcast %22 : vector<2x8x1xf32> to vector<2x8x8xf32>
    %24 = arith.mulf %19, %23 : vector<2x8x8xf32>
    "tpu.trace_start"() <{level = 10 : i32, message = "bqk,bkd->bqd"}> : () -> ()
    %cst_9 = arith.constant dense<0.000000e+00> : vector<2x8x128xf32>
    %25 = tpu.matmul %24, %11, %cst_9 {dimension_numbers = #tpu.dot_dimension_numbers<[2], [1], [1], [2], [0, 0, 0, 1, 1, 2], [0], [0]>} : vector<2x8x8xf32>, vector<2x8x128xf32>, vector<2x8x128xf32> -> vector<2x8x128xf32>
    "tpu.trace_stop"() : () -> ()
    %26 = vector.shape_cast %25 : vector<2x8x128xf32> to vector<16x128xf32>
    %c0_10 = arith.constant 0 : index
    %c0_11 = arith.constant 0 : index
    %27 = vector.load %arg4[%c0_10, %c0_11] : memref<16x128xf32, #tpu.memory_space<vmem>>, vector<16x128xf32>
    tpu.vector_store %arg4[%c0_10, %c0_11], %26 {strides = array<i32>} : memref<16x128xf32, #tpu.memory_space<vmem>>, vector<16x128xf32>,
    return
  }
  func.func @transform_0(%arg0: i32) -> (i32, i32) {
    %c0_i32 = arith.constant 0 : i32
    %c0_i32_0 = arith.constant 0 : i32
    %c0_i32_1 = arith.constant 0 : i32
    return %c0_i32, %c0_i32_0 : i32, i32
  }
  func.func @transform_1(%arg0: i32) -> (i32, i32) {
    %c0_i32 = arith.constant 0 : i32
    %c0_i32_0 = arith.constant 0 : i32
    %c0_i32_1 = arith.constant 0 : i32
    return %c0_i32, %c0_i32_0 : i32, i32
  }
  func.func @transform_2(%arg0: i32) -> (i32, i32) {
    %c0_i32 = arith.constant 0 : i32
    %c0_i32_0 = arith.constant 0 : i32
    %c0_i32_1 = arith.constant 0 : i32
    return %c0_i32, %c0_i32_0 : i32, i32
  }
  func.func @transform_3(%arg0: i32) -> (i32, i32) {
    %c0_i32 = arith.constant 0 : i32
    %c0_i32_0 = arith.constant 0 : i32
    %c0_i32_1 = arith.constant 0 : i32
    return %c0_i32, %c0_i32_0 : i32, i32
  }
}

</mosaic_0001>

<bundles_post_ra>
// kernel: transformer_attn_pallas.1
= control target key start
LH: loop header
LB: loop body
LE: loop exit
PB: predicated region body
PF: predicated region fallthrough
CT: control target
= control target key end

     0   :  { %8 = vsyncpa [#allocation3], 0  ;;  %s646_s12 = smov [#allocation2]   ;;  %s722_s0 = inlined_call_operand.vmem [shape: f32[16,40], index: 0, kind: input, shape index: {}]   ;;  %s723_s1 = inlined_call_operand.hbm [shape: f32[40,384], index: 1, kind: input, shape index: {}]   ;;  %s724_s2 = inlined_call_operand.vmem [shape: f32[1,384], index: 2, kind: input, shape index: {}]   ;;  %s725_s3 = inlined_call_operand.vmem [shape: f32[16,128], index: 3, kind: output, shape index: {}]  }
   0x1   :  { %s16_s13 = sshll.u32 %s646_s12, 4  ;;  %s622_s16 = scalar_lea.hbm %s723_s1, 1920  ;;  %s17_s13 = int_to_ptr.vmem [resolvable:$true] %s16_s13 }
   0x2   :  { %p623_p0 = scmp.ne.s32.totalorder %s723_s1, %s622_s16  ;;  %p626_p1 = scmp.lt.u32.totalorder %s622_s16, %s723_s1 }
   0x4   :  { %p628_p2 = pnand %p626_p1, %p623_p0 }
   0x6   :  { %631 = shalt.err (!%p628_p2)
}
   0x7   :  { %s632_s21 = scalar_lea.vmem %s17_s13, 1920  ;;  %p637_p4 = scmp.lt.s32.totalorder %s17_s13, %s17_s13 }
   0x8   :  { %p633_p3 = scmp.ne.s32.totalorder %s17_s13, %s632_s21  ;;  %p638_p5 = scmp.lt.s32.totalorder %s632_s21, %s632_s21 }
   0xa   :  { %p639_p6 = por %p638_p5, %p637_p4 }
   0xc   :  { %p640_p7 = pnand %p639_p6, %p633_p3 }
   0xe   :  { %643 = shalt.err (!%p640_p7)
}
   0xf   :  { %s647_s22 = smov 384   ;;  %s648_s23 = smov 24  }
  0x10   :  { %22 = dma.hbm_to_vmem [thread:$0]  %s723_s1, 1920, %s17_s13, [#allocation3], %s647_s22, %s647_s22, %s648_s23  }
  0x11   :  { %644 = dma.done.wait [#allocation3], 1920  }
  0x12   :  { %645 = vsyncadd [#allocation3], 4294965376  ;;  %v649_v0 = vmov 0.0   ;;  %v31_v1 = vld [vmem:[#allocation2 + $0x8] sm:$0xff]  ;;  %v34_v2 = vld [vmem:[#allocation2 + $0x20] sm:$0xff]  ;;  %vm62_vm0 = vcmask 326656   ;;  %v47_v24 = vlaneseq }
  0x13   :  { %133 = vmatprep.mubr.f32.mxu0 %v649_v0  ;;  %v30_v3 = vld [vmem:[#allocation2] sm:$0xff]  ;;  %v593_v4 = vpack.c.bf16 %v34_v2, %v31_v1  ;;  %v33_v5 = vld [vmem:[#allocation2 + $0x18] sm:$0xff]  ;;  %v40_v7 = vld [vmem:[#allocation2 + $0x50] sm:$0xff]  ;;  %vm650_vm1 = vmmov 0   ;;  %vm363_vm2 = vcmask 64512  }
  0x14   :  { %v37_v6 = vld [vmem:[#allocation2 + $0x38] sm:$0xff]  ;;  %v595_v8 = vpack.c.bf16 %v33_v5, %v30_v3  ;;  %v36_v10 = vld [vmem:[#allocation2 + $0x30] sm:$0xff]  ;;  %v39_v11 = vld [vmem:[#allocation2 + $0x48] sm:$0xff]  ;;  %v48_v25 = vshrl.u32 %v47_v24, 7 }
  0x15   :  { %v597_v9 = vpack.c.bf16 %v40_v7, %v37_v6  ;;  %594 = vmatprep.subr.bf16.mxu0 %v593_v4  ;;  %v28_v12 = vld [vmem:[%s722_s0] sm:$0xff]  ;;  %v599_v13 = vpack.c.bf16 %v39_v11, %v36_v10  ;;  %v32_v14 = vld [vmem:[#allocation2 + $0x10] sm:$0xff]  ;;  %v35_v15 = vld [vmem:[#allocation2 + $0x28] sm:$0xff] }
  0x16   :  { %596 = vmatpush1.bf16.msra.mxu0 %v595_v8  ;;  %v38_v16 = vld [vmem:[#allocation2 + $0x40] sm:$0xff]  ;;  %570 = vmatprep.mubr.msk.f32.mxu1 %vm62_vm0, %v28_v12  ;;  %v601_v17 = vpack.c.bf16 %v35_v15, %v32_v14  ;;  %v41_v18 = vld [vmem:[#allocation2 + $0x58] sm:$0xff]  ;;  %v43_v19 = vld [vmem:[#allocation2 + $0x68] sm:$0xff]  ;;  %v53_v26 = vsub.s32 1, %v48_v25  ;;  %v49_v28 = vsub.s32 0, %v48_v25  ;;  %v57_v30 = vsub.s32 2, %v48_v25 }
  0x17   :  { %598 = vmatprep.subr.bf16.mxu0 %v597_v9  ;;  %v605_v20 = vpack.c.bf16 %v41_v18, %v38_v16  ;;  %v42_v21 = vld [vmem:[#allocation2 + $0x60] sm:$0xff]  ;;  %v44_v22 = vld [vmem:[#allocation2 + $0x70] sm:$0xff]  ;;  %v29_v23 = vld [vmem:[%s722_s0 + $0x8] sm:$0xff] }
  0x18   :  { %602 = vmatprep.subr.bf16.mxu1 %v601_v17  ;;  %v45_v27 = vld [vmem:[%s724_s2] sm:$0x7] }
  0x19   :  { %604 = vmatpush3.bf16.msra.mxu1 %v601_v17  ;;  %v54_v29 = vrot.slane %v45_v27, %v53_v26  ;;  %v50_v32 = vrot.slane %v45_v27, %v49_v28  ;;  %v58_v35 = vrot.slane %v45_v27, %v57_v30 }
  0x1a   :  { %600 = vmatpush1.bf16.msra.mxu0 %v599_v13  ;;  %606 = vmatprep.subr.bf16.mxu1 %v605_v20 }
  0x1b   :  { %77 = vmatprep.subr.mxu0 %v43_v19 }
  0x1d   :  { %608 = vmatpush3.bf16.msra.mxu1 %v605_v20 }
  0x1e   :  { %78 = vmatpush1.msra.mxu0 %v42_v21  ;;  %568 = vmatprep.subr.mxu1 %v44_v22 }
  0x1f   :  { %539 = vmatmul.mubr.msk.f32.vlgmr.msra.gmra.mrb[0].mxu0 %vm62_vm0, %v28_v12  ;;  %578 = vmatprep.subr.mxu0 %v649_v0 }
  0x20   :  { %139 = vmatprep.mubr.f32.mxu0 %v649_v0 }
  0x21   :  { %569 = vmatpush3.msra.mxu1 %v44_v22 }
  0x22   :  { %571 = vmatmul.mubr.msk.f32.vlgmr.msra.gmra.mrb[0].mxu1 %vm62_vm0, %v29_v23  ;;  %573 = vmatprep.subr.mxu1 %v649_v0 }
  0x23   :  { %540 = vmatmul.mubr.msk.f32.gmra.mrb[2].mxu0 %vm62_vm0, %v29_v23  ;;  %575 = vmatprep.mubr.msk.f32.mxu1 %vm650_vm1, %v649_v0 }
  0x24   :  { %580 = vmatprep.mubr.msk.f32.mxu0 %vm650_vm1, %v649_v0 }
  0xf2   :  { %v135_v31 = vpop.f32.mrb[0].mxu0 }
  0xf3   :  { %v137_v33 = vpop.f32.mrb[1].mxu0  ;;  %v136_v38 = vadd.f32 %v135_v31, %v50_v32 }
  0xf4   :  { %v138_v34 = vadd.f32 %v137_v33, %v54_v29 }
  0xf5   :  { %v572_v37 = vpop.f32.mrb[0].mxu1 }
  0xf6   :  { %v141_v36 = vpop.f32.mrb[2].mxu0  ;;  %574 = vmatpush3.xpose.msra.mxu1 %v138_v34  ;;  %v212_v40 = vpop.f32.mrb[1].mxu1  ;;  %v218_v43 = vadd.f32 %v572_v37, %v58_v35 }
  0xf7   :  { %v143_v39 = vpop.f32.mrb[3].mxu0  ;;  %583 = vmatprep.subr.mxu1 %v649_v0  ;;  %v213_v42 = vadd.f32 %v212_v40, %v58_v35  ;;  %v142_v44 = vadd.f32 %v141_v36, %v50_v32 }
  0xf8   :  { %v144_v41 = vadd.f32 %v143_v39, %v54_v29 }
  0xf9   :  { %576 = vmatmul.mubr.f32.vlgmr.msra.gmra.mrb[2].mxu1 %v136_v38 }
  0xfa   :  { %579 = vmatpush3.xpose.msra.mxu0 %v144_v41  ;;  %584 = vmatpush3.msra.mxu1 %v213_v42 }
  0xfb   :  { %588 = vmatprep.subr.mxu0 %v649_v0  ;;  %585 = vmatprep.mubr.msk.f32.mxu1 %vm650_vm1, %v649_v0 }
  0xfd   :  { %581 = vmatmul.mubr.f32.vlgmr.msra.gmra.mrb[4].mxu0 %v142_v44 }
  0xfe   :  { %589 = vmatpush3.msra.mxu0 %v218_v43  ;;  %590 = vmatprep.mubr.msk.f32.mxu0 %vm650_vm1, %v649_v0 }
 0x1cc   :  { %v287_v45 = vpop.f32.mrb[2].mxu1 }
 0x1cd   :  { %v361_v46 = vmul.f32 0.15811388, %v287_v45  ;;  %v577_v47 = vpop.f32.mrb[3].mxu1 }
 0x1cf   :  { %v364_v48 = vsel %vm363_vm2, %v361_v46, -inf }
 0x1d0   :  { %v357_v49 = vpop.f32.mrb[4].mxu0  ;;  %365 = vmax.xlane.f32.xlu0 %v364_v48 }
 0x1d1   :  { %v362_v50 = vmul.f32 0.15811388, %v357_v49  ;;  %v582_v51 = vpop.f32.mrb[5].mxu0 }
 0x1d3   :  { %v367_v52 = vsel %vm363_vm2, %v362_v50, -inf }
 0x1d4   :  { %368 = vmax.xlane.f32.xlu0 %v367_v52 }
 0x25d   :  { %v366_v53 = vpop.xlane.xlu0 %365 }
 0x25e   :  { %v370_v54 = vsub.f32 %v361_v46, %v366_v53 }
 0x260   :  { %v372_v55 = vmul.f32 1.442695, %v370_v54 }
 0x261   :  { %v369_v56 = vpop.xlane.xlu0 %368 }
 0x262   :  { %614 = vpow2.f32 %v372_v55  ;;  %v371_v57 = vsub.f32 %v362_v50, %v369_v56 }
 0x264   :  { %v374_v58 = vmul.f32 1.442695, %v371_v57 }
 0x266   :  { %616 = vpow2.f32 %v374_v58 }
 0x26c   :  { %v615_v59 = vpop.eup %614 }
 0x26d   :  { %v376_v60 = vsel %vm363_vm2, %v615_v59, 0.0 }
 0x26e   :  { %377 = vadd.xlane.f32.xlu1 %v376_v60 }
 0x270   :  { %v617_v61 = vpop.eup %616 }
 0x271   :  { %v379_v62 = vsel %vm363_vm2, %v617_v61, 0.0 }
 0x272   :  { %380 = vadd.xlane.f32.xlu1 %v379_v62 }
 0x2fb   :  { %v378_v63 = vpop.xlane.xlu1 %377 }
 0x2fc   :  { %618 = vrcp.f32 %v378_v63 }
 0x2ff   :  { %v381_v0 = vpop.xlane.xlu1 %380 }
 0x300   :  { %620 = vrcp.f32 %v381_v0 }
 0x306   :  { %v619_v1 = vpop.eup %618 }
 0x307   :  { %v384_v2 = vmul.f32 %v619_v1, %v615_v59 }
 0x309   :  { %586 = vmatmul.mubr.msk.f32.vlgmr.msra.gmra.mrb[4].mxu1 %vm363_vm2, %v384_v2 }
 0x30a   :  { %v621_v3 = vpop.eup %620 }
 0x30b   :  { %v385_v4 = vmul.f32 %v621_v3, %v617_v61 }
 0x30d   :  { %591 = vmatmul.mubr.msk.f32.vlgmr.msra.gmra.mrb[6].mxu0 %vm363_vm2, %v385_v4 }
 0x3dc   :  { %v455_v5 = vpop.f32.mrb[4].mxu1 }
 0x3dd   :  { %532 = vst [vmem:[%s725_s3] sm:$0xff] %v455_v5  ;;  %v587_v6 = vpop.f32.mrb[5].mxu1 }
 0x3e0   :  { %v528_v7 = vpop.f32.mrb[6].mxu0 }
 0x3e1   :  { %533 = vst [vmem:[%s725_s3 + $0x8] sm:$0xff] %v528_v7  ;;  %v592_v8 = vpop.f32.mrb[7].mxu0 }
 0x3e2   :  { %538 = vsyncpa [#allocation3], 1 }

</bundles_post_ra>
